<compile_context>
chip_gen: v7x
topology: tpu7x:2x2x1
jax: 0.10.0
libtpu: 0.0.40
codegen_flags: <defaults>
</compile_context>

<pallas_src>
import jax
import jax.numpy as jnp
from jax.experimental import pallas as pl
from jax.experimental.pallas import tpu as pltpu


def _round_up(x, m):
    return (x + m - 1) // m * m


def _vmem_limit_bytes():
    """Generation-aware scoped-VMEM limit (v7x only has 64 MiB per TensorCore)."""
    try:
        cap = int(pltpu.get_tpu_info().vmem_capacity_bytes)
    except Exception:
        cap = 64 * 1024 * 1024  # conservative fallback (v7x physical size)
    return min(int(0.75 * cap), 96 * 1024 * 1024)


# ----------------------------------------------------------------------------
# Pallas kernel: Y = PReLU(X @ W + bias)
#   x_ref: [tm, K] (bf16)   w_ref: [K, tn] (bf16)
#   b_ref, a_ref: [1, tn] (f32)   o_ref: [tm, tn] (f32)
# ----------------------------------------------------------------------------
def _conv1x1_prelu_kernel(x_ref, w_ref, b_ref, a_ref, o_ref):
    y = jnp.dot(x_ref[...], w_ref[...], preferred_element_type=jnp.float32)
    y = y + b_ref[...]
    o_ref[...] = jnp.where(y >= 0.0, y, y * a_ref[...]).astype(o_ref.dtype)


def conv1x1_prelu(x2d, w, bias, alpha, *, tile_m=256, tile_n=256):
    """Fused 1x1-conv (+bias) + PReLU on the MXU.

    x2d:   [M, K]  channels-last activations (bf16 or f32)
    w:     [K, Nc] conv weight in (Cin, Cout) layout (bf16 or f32)
    bias:  [Nc]    f32
    alpha: [1] or [Nc] f32 PReLU slope(s)
    """
    M, K = x2d.shape
    Kw, Nc = w.shape
    assert Kw == K

    # Lane-dense Cout tiles (multiples of 128) when the layer allows it;
    # otherwise fall back to the full (narrow) channel dim and rely on wide
    # M tiles for store efficiency.
    if tile_n >= 256 and Nc % 256 == 0:
        tn = 256
    elif Nc % 128 == 0:
        tn = 128
    else:
        tn = Nc

    # M tiling: bounds VMEM independent of image size, enables real DMA/compute
    # pipelining and lets the v7x TensorCores split rows.
    tm = min(tile_m, _round_up(M, 8))
    Mp = _round_up(M, tm)
    if Mp != M:  # pad ragged row tail; padded rows are sliced off afterwards
        x2d = jnp.pad(x2d, ((0, Mp - M), (0, 0)))

    bias2 = bias.reshape(1, Nc).astype(jnp.float32)
    alpha2 = jnp.broadcast_to(alpha.astype(jnp.float32).reshape(1, -1), (1, Nc))

    out = pl.pallas_call(
        _conv1x1_prelu_kernel,
        out_shape=jax.ShapeDtypeStruct((Mp, Nc), jnp.float32),
        grid=(Mp // tm, Nc // tn),
        in_specs=[
            pl.BlockSpec((tm, K), lambda i, j: (i, 0)),
            pl.BlockSpec((K, tn), lambda i, j: (0, j)),
            pl.BlockSpec((1, tn), lambda i, j: (0, j)),
            pl.BlockSpec((1, tn), lambda i, j: (0, j)),
        ],
        out_specs=pl.BlockSpec((tm, tn), lambda i, j: (i, j)),
        compiler_params=pltpu.CompilerParams(
            dimension_semantics=("parallel", "parallel"),
            vmem_limit_bytes=_vmem_limit_bytes(),
        ),
    )(x2d, w, bias2, alpha2)

    return out[:M] if Mp != M else out


# ----------------------------------------------------------------------------
# Module wrapper (NCHW in / NCHW out, like the PyTorch module)
# ----------------------------------------------------------------------------
def up_forward(params, x_nchw, *, compute_dtype=jnp.bfloat16):
    N, C, H, W = x_nchw.shape
    assert C % 4 == 0, "PixelShuffle(2) needs channel_in % 4 == 0"

    x = jnp.transpose(x_nchw, (0, 2, 3, 1))                 # NCHW -> NHWC
    x2d = x.reshape(N * H * W, C).astype(compute_dtype)
    w = params["w"].astype(compute_dtype)                   # [Cin, Cout]

    y = conv1x1_prelu(x2d, w, params["b"], params["alpha"])  # [M, C] f32

    # PixelShuffle(2): c_in = 4*c_out + 2*i + j ; out[n, 2h+i, 2w+j, c_out]
    y = y.reshape(N, H, W, C // 4, 2, 2)
    y = jnp.transpose(y, (0, 1, 4, 2, 5, 3)).reshape(N, 2 * H, 2 * W, C // 4)
    return jnp.transpose(y, (0, 3, 1, 2))                    # NHWC -> NCHW


# ----------------------------------------------------------------------------
# Deterministic parameter init (mirrors PyTorch defaults)
# ----------------------------------------------------------------------------
def init_up_params(key, channel_in):
    kw, kb = jax.random.split(key)
    bound = 1.0 / jnp.sqrt(jnp.float32(channel_in))          # Conv2d-style init
    w = jax.random.uniform(kw, (channel_in, channel_in), jnp.float32, -bound, bound)
    b = jax.random.uniform(kb, (channel_in,), jnp.float32, -bound, bound)
    alpha = jnp.full((1,), 0.25, jnp.float32)                 # nn.PReLU() default
    return {"w": w, "b": b, "alpha": alpha}


# ----------------------------------------------------------------------------
# Pure-JAX reference (same bf16 operand rounding as the kernel path)
# ----------------------------------------------------------------------------
def up_reference(params, x_nchw, *, compute_dtype=jnp.bfloat16):
    N, C, H, W = x_nchw.shape
    x = x_nchw.astype(compute_dtype).astype(jnp.float32)
    w = params["w"].astype(compute_dtype).astype(jnp.float32)
    y = jnp.einsum("nchw,cd->ndhw", x, w) + params["b"][None, :, None, None]
    a = params["alpha"].astype(jnp.float32).reshape(-1)
    if a.shape[0] != C:
        a = jnp.broadcast_to(a, (C,))
    y = jnp.where(y >= 0.0, y, y * a[None, :, None, None])
    y = y.reshape(N, C // 4, 2, 2, H, W)
    y = jnp.transpose(y, (0, 1, 4, 2, 5, 3)).reshape(N, C // 4, 2 * H, 2 * W)
    return y


if __name__ == "__main__":
    key = jax.random.PRNGKey(0)
    kp, kx = jax.random.split(key)

    channel_in = 128                     # lane-dense channel count; any multiple of 4 works
    params = init_up_params(kp, channel_in)
    x = jax.random.normal(kx, (2, channel_in, 16, 16), jnp.float32)   # NCHW

    fwd = jax.jit(up_forward)
    out = fwd(params, x)
    jax.block_until_ready(out)

    assert out.shape == (2, channel_in // 4, 32, 32), out.shape
    assert bool(jnp.all(jnp.isfinite(out)))

    ref = up_reference(params, x)
    max_err = float(jnp.max(jnp.abs(out - ref)))
    assert max_err < 1e-2, f"max abs err {max_err}"

    print("KERNEL_OK")
</pallas_src>

<mosaic_0001>
module attributes {stable_mosaic.version = 11 : i64} {
  func.func @_conv1x1_prelu_kernel(%arg0: i32, %arg1: i32, %arg2: memref<256x128xbf16, #tpu.memory_space<vmem>>, %arg3: memref<128x128xbf16, #tpu.memory_space<vmem>>, %arg4: memref<1x128xf32, #tpu.memory_space<vmem>>, %arg5: memref<1x128xf32, #tpu.memory_space<vmem>>, %arg6: memref<256x128xf32, #tpu.memory_space<vmem>>) attributes {dimension_semantics = [#tpu.dimension_semantics<parallel>, #tpu.dimension_semantics<parallel>], iteration_bounds = array<i64: 2, 1>, scalar_prefetch = 0 : i64, scratch_operands = 0 : i64, tpu.core_type = #tpu.core_type<tc>, window_params = [{transform_indices = @transform_0, window_bounds = array<i64: 256, 128>}, {transform_indices = @transform_1, window_bounds = array<i64: 128, 128>}, {transform_indices = @transform_2, window_bounds = array<i64: 1, 128>}, {transform_indices = @transform_3, window_bounds = array<i64: 1, 128>}, {transform_indices = @transform_4, window_bounds = array<i64: 256, 128>}]} {
    %c0 = arith.constant 0 : index
    %c0_0 = arith.constant 0 : index
    %0 = vector.load %arg2[%c0, %c0_0] : memref<256x128xbf16, #tpu.memory_space<vmem>>, vector<256x128xbf16>
    %c0_1 = arith.constant 0 : index
    %c0_2 = arith.constant 0 : index
    %1 = vector.load %arg3[%c0_1, %c0_2] : memref<128x128xbf16, #tpu.memory_space<vmem>>, vector<128x128xbf16>
    %cst = arith.constant dense<0.000000e+00> : vector<256x128xf32>
    %2 = tpu.matmul %0, %1, %cst {dimension_numbers = #tpu.dot_dimension_numbers<[1], [0], [0], [1], [0, 0, 1, 1], [], []>} : vector<256x128xbf16>, vector<128x128xbf16>, vector<256x128xf32> -> vector<256x128xf32>
    %c0_3 = arith.constant 0 : index
    %c0_4 = arith.constant 0 : index
    %3 = vector.load %arg4[%c0_3, %c0_4] : memref<1x128xf32, #tpu.memory_space<vmem>>, vector<1x128xf32>
    %4 = vector.broadcast %3 : vector<1x128xf32> to vector<256x128xf32>
    %5 = arith.addf %2, %4 : vector<256x128xf32>
    %cst_5 = arith.constant 0.000000e+00 : f32
    %6 = vector.broadcast %cst_5 : f32 to vector<256x128xf32>
    %7 = arith.cmpf oge, %5, %6 : vector<256x128xf32>
    %c0_6 = arith.constant 0 : index
    %c0_7 = arith.constant 0 : index
    %8 = vector.load %arg5[%c0_6, %c0_7] : memref<1x128xf32, #tpu.memory_space<vmem>>, vector<1x128xf32>
    %9 = vector.broadcast %8 : vector<1x128xf32> to vector<256x128xf32>
    %10 = arith.mulf %5, %9 : vector<256x128xf32>
    %11 = arith.select %7, %5, %10 : vector<256x128xi1>, vector<256x128xf32>
    %c0_8 = arith.constant 0 : index
    %c0_9 = arith.constant 0 : index
    %12 = vector.load %arg6[%c0_8, %c0_9] : memref<256x128xf32, #tpu.memory_space<vmem>>, vector<256x128xf32>
    tpu.vector_store %arg6[%c0_8, %c0_9], %11 {strides = array<i32>} : memref<256x128xf32, #tpu.memory_space<vmem>>, vector<256x128xf32>,
    return
  }
  func.func @transform_0(%arg0: i32, %arg1: i32) -> (i32, i32) {
    %c0_i32 = arith.constant 0 : i32
    %c0_i32_0 = arith.constant 0 : i32
    return %arg0, %c0_i32 : i32, i32
  }
  func.func @transform_1(%arg0: i32, %arg1: i32) -> (i32, i32) {
    %c0_i32 = arith.constant 0 : i32
    %c0_i32_0 = arith.constant 0 : i32
    return %c0_i32, %arg1 : i32, i32
  }
  func.func @transform_2(%arg0: i32, %arg1: i32) -> (i32, i32) {
    %c0_i32 = arith.constant 0 : i32
    %c0_i32_0 = arith.constant 0 : i32
    return %c0_i32, %arg1 : i32, i32
  }
  func.func @transform_3(%arg0: i32, %arg1: i32) -> (i32, i32) {
    %c0_i32 = arith.constant 0 : i32
    %c0_i32_0 = arith.constant 0 : i32
    return %c0_i32, %arg1 : i32, i32
  }
  func.func @transform_4(%arg0: i32, %arg1: i32) -> (i32, i32) {
    %c0_i32 = arith.constant 0 : i32
    return %arg0, %arg1 : i32, i32
  }
}

</mosaic_0001>

<bundles_post_ra>
// kernel: up_forward.1
= control target key start
LH: loop header
LB: loop body
LE: loop exit
PB: predicated region body
PF: predicated region fallthrough
CT: control target
= control target key end

     0   :  { %9 = vsyncpa [#allocation3], 0  ;;  %s1154_s15 = smov 0   ;;  %s1156_s16 = smov 0   ;;  %s1380_s0 = inlined_call_operand.vmem [shape: bf16[512,128], index: 0, kind: input, shape index: {}]   ;;  %s1381_s1 = inlined_call_operand.vmem [shape: bf16[128,128], index: 1, kind: input, shape index: {}]   ;;  %s1382_s2 = inlined_call_operand.hbm [shape: f32[1,128], index: 2, kind: input, shape index: {}]   ;;  %s1383_s3 = inlined_call_operand.vmem [shape: f32[1,128], index: 3, kind: input, shape index: {}]   ;;  %s1384_s4 = inlined_call_operand.vmem [shape: f32[512,128], index: 4, kind: output, shape index: {}]  }
   0x1   :  { %s1158_s17 = smov 0  }
   0x2 LB: > { %s884_s18 = sadd.s32 4294967295, %s1126_s17   ;;  %s27_s19 = sadd.s32 1, %s1122_s16  ;;  %s1126_s17 = sphi %s1158_s17, %s15_s17   ;;  %s1122_s16 = sphi %s1156_s16, %s1394_s16   ;;  %s1118_s15 = sphi %s1154_s15, %s1393_s15  }
   0x3   : > { %p29_p0 = scmp.ge.s32.totalorder %s27_s19, 2  ;;  %p886_p1 = scmp.ge.s32.totalorder %s1126_s17, 1 }
   0x4   : > { %p164_p2 = scmp.lt.s32.totalorder %s1126_s17, 3  ;;  %p1179_p4 = scmp.eq.s32.totalorder %s884_s18, 0 }
   0x5   : > { %s1396_s19 = smov (%p29_p0, %s27_s19), 0  ;;  %s1128_s22 = smov [#allocation2]  }
   0x6   : > { %p1175_p3 = pnand %p886_p1, %p164_p2  ;;  %s186_s23 = sshll.u32 %s1128_s22, 4  ;;  %s187_s23 = int_to_ptr.vmem [resolvable:$true] %s186_s23 }
   0x7   : > { %s1389_s21 = scalar_select %p1179_p4, 1, 0 }
   0x8   : > { %s1388_s20 = scalar_select %p1175_p3, 1, 0 }
   0x9   : > { %p1017_p5 = pneg %p1175_p3  ;;  %s1072_s27 = scalar_lea.hbm %s1382_s2, 16 }
   0xa   : > { %p1073_p7 = scmp.ne.s32.totalorder %s1382_s2, %s1072_s27  ;;  %p1079_p11 = scmp.lt.u32.totalorder %s1072_s27, %s1382_s2 }
   0xb   : > { %p1187_p6 = pnand %p1179_p4, %p1017_p5 }
   0xd   : > { %p1074_p8 = pneg %p1187_p6 }
   0xf   : > { %p1075_p9 = pnand %p1074_p8, %p1073_p7 }
  0x11   : > { %p1076_p10 = pneg %p1075_p9 }
  0x13   : > { %p1081_p12 = pnand %p1079_p11, %p1076_p10 }
  0x15   : > { %1084 = shalt.err (!%p1081_p12)
}
  0x16   : > { %s1085_s6 = scalar_lea.vmem %s187_s23, 16  ;;  %s1092_s7 = scalar_lea.vmem %s187_s23, 32 }
  0x17   : > { %p1086_p13 = scmp.ne.s32.totalorder %s187_s23, %s1085_s6  ;;  %p1093_p2 = scmp.lt.s32.totalorder %s187_s23, %s187_s23 }
  0x18   : > { %p1094_p5 = scmp.lt.s32.totalorder %s1092_s7, %s1085_s6 }
  0x19   : > { %p1088_p0 = pnand %p1086_p13, %p1074_p8 }
  0x1a   : > { %p1095_p4 = por %p1094_p5, %p1093_p2 }
  0x1b   : > { %p1089_p1 = pneg %p1088_p0 }
  0x1d   : > { %p1096_p3 = pnand %p1095_p4, %p1089_p1 }
  0x1f   : > { %1099 = shalt.err (!%p1096_p3)
}
  0x20   : > { %1020 = dma.hbm_to_vmem [thread:$0]  (!%p1187_p6), %s1382_s2, 16, %s187_s23, [#allocation3]  }
  0x21   : > { %p1391_p7 = scmp.ne.s32.totalorder %s1388_s20, 0 }
  0x22   : > { %p1392_p9 = scmp.ne.s32.totalorder (!%p1391_p7), %s1389_s21, 0 }
  0x23   : > { %214 = sbr.rel (%p1391_p7) target bundleno = 324 (0x144), region = 36 }
  0x2a   : > { %1113 = dma.done.wait (%p1392_p9), [#allocation3], 16  }
  0x2b   : > { %1115 = vsyncadd (%p1392_p9), [#allocation3], 4294967280  ;;  %s893_s10 = sshll.u32 %s1118_s15, 5  ;;  %v1048_v0 = vld [vmem:[%s1381_s1] sm:$0xff]   ;;  %v1049_v1 = vld [vmem:[%s1381_s1 + $0x8] sm:$0xff]  }
  0x2c   : > { %p251_p8 = scmp.lt.s32.totalorder %s893_s10, 63  ;;  %949 = vmatprep.subr.bf16.mxu0 %v1048_v0  ;;  %997 = vmatprep.subr.bf16.mxu1 %v1048_v0  ;;  %v1050_v2 = vld [vmem:[%s1381_s1 + $0x10] sm:$0xff]   ;;  %v1051_v3 = vld [vmem:[%s1381_s1 + $0x18] sm:$0xff]   ;;  %v1052_v6 = vld [vmem:[%s1381_s1 + $0x20] sm:$0xff]  }
  0x2d   : > { %950 = vmatpush3.bf16.msra.mxu0 %v1048_v0  ;;  %1005 = vmatpush3.bf16.msra.mxu1 %v1048_v0  ;;  %v1053_v7 = vld [vmem:[%s1381_s1 + $0x28] sm:$0xff]   ;;  %v1054_v8 = vld [vmem:[%s1381_s1 + $0x30] sm:$0xff]   ;;  %v1055_v9 = vld [vmem:[%s1381_s1 + $0x38] sm:$0xff]  }
  0x2e   : > { %s1398_s10 = smov (!%p251_p8, %s893_s10), 63  ;;  %951 = vmatprep.subr.bf16.mxu0 %v1049_v1  ;;  %998 = vmatprep.subr.bf16.mxu1 %v1049_v1  ;;  %v1262_v24 = vld [vmem:[#allocation2] ss:$0 sm:$0xff] }
  0x2f   : > { %s894_s18 = sshll.u32 %s1398_s10, 2  ;;  %s896_s8 = sshll.u32 %s1398_s10, 3  ;;  %v1268_v26 = vld [vmem:[%s1383_s3] ss:$0 sm:$0xff] }
  0x30   : > { %s1229_s23 = scalar_lea.vmem %s1380_s0, %s894_s18  ;;  %s1277_s13 = scalar_lea.vmem %s1384_s4, %s896_s8 }
  0x31   : > { %952 = vmatpush3.bf16.msra.mxu0 %v1049_v1  ;;  %1006 = vmatpush3.bf16.msra.mxu1 %v1049_v1  ;;  %v1056_v4 = vld [vmem:[%s1229_s23] sm:$0xff]   ;;  %v1058_v10 = vld [vmem:[%s1229_s23 + $0x8] sm:$0xff]   ;;  %v1060_v12 = vld [vmem:[%s1229_s23 + $0x10] sm:$0xff]  }
  0x32   : > { %953 = vmatprep.subr.bf16.mxu0 %v1050_v2  ;;  %999 = vmatprep.subr.bf16.mxu1 %v1050_v2  ;;  %v1057_v5 = vld [vmem:[%s1229_s23 + $0x40] sm:$0xff]   ;;  %v1059_v11 = vld [vmem:[%s1229_s23 + $0x48] sm:$0xff]   ;;  %v1061_v13 = vld [vmem:[%s1229_s23 + $0x50] sm:$0xff]  }
  0x33   : > { %965 = vmatprep.mubr.bf16.mxu0 %v1056_v4  ;;  %981 = vmatprep.mubr.bf16.mxu1 %v1057_v5  ;;  %v1062_v14 = vld [vmem:[%s1229_s23 + $0x18] sm:$0xff]   ;;  %v1064_v16 = vld [vmem:[%s1229_s23 + $0x20] sm:$0xff]   ;;  %v1066_v18 = vld [vmem:[%s1229_s23 + $0x28] sm:$0xff]  }
  0x34   : > { %v1063_v15 = vld [vmem:[%s1229_s23 + $0x58] sm:$0xff]   ;;  %v1065_v17 = vld [vmem:[%s1229_s23 + $0x60] sm:$0xff]   ;;  %v1067_v19 = vld [vmem:[%s1229_s23 + $0x68] sm:$0xff]  }
  0x35   : > { %954 = vmatpush3.bf16.msra.mxu0 %v1050_v2  ;;  %1007 = vmatpush3.bf16.msra.mxu1 %v1050_v2  ;;  %v1068_v20 = vld [vmem:[%s1229_s23 + $0x30] sm:$0xff]   ;;  %v1070_v22 = vld [vmem:[%s1229_s23 + $0x38] sm:$0xff]  }
  0x36   : > { %955 = vmatprep.subr.bf16.mxu0 %v1051_v3  ;;  %1000 = vmatprep.subr.bf16.mxu1 %v1051_v3  ;;  %v1069_v21 = vld [vmem:[%s1229_s23 + $0x70] sm:$0xff]   ;;  %v1071_v23 = vld [vmem:[%s1229_s23 + $0x78] sm:$0xff]  }
  0x39   : > { %956 = vmatpush3.bf16.msra.mxu0 %v1051_v3  ;;  %1008 = vmatpush3.bf16.msra.mxu1 %v1051_v3 }
  0x3a   : > { %957 = vmatprep.subr.bf16.mxu0 %v1052_v6  ;;  %1001 = vmatprep.subr.bf16.mxu1 %v1052_v6 }
  0x3d   : > { %958 = vmatpush3.bf16.msra.mxu0 %v1052_v6  ;;  %1009 = vmatpush3.bf16.msra.mxu1 %v1052_v6 }
  0x3e   : > { %959 = vmatprep.subr.bf16.mxu0 %v1053_v7  ;;  %1002 = vmatprep.subr.bf16.mxu1 %v1053_v7 }
  0x41   : > { %960 = vmatpush3.bf16.msra.mxu0 %v1053_v7  ;;  %1010 = vmatpush3.bf16.msra.mxu1 %v1053_v7 }
  0x42   : > { %961 = vmatprep.subr.bf16.mxu0 %v1054_v8  ;;  %1003 = vmatprep.subr.bf16.mxu1 %v1054_v8 }
  0x45   : > { %962 = vmatpush3.bf16.msra.mxu0 %v1054_v8  ;;  %1011 = vmatpush3.bf16.msra.mxu1 %v1054_v8 }
  0x46   : > { %963 = vmatprep.subr.bf16.mxu0 %v1055_v9  ;;  %1004 = vmatprep.subr.bf16.mxu1 %v1055_v9 }
  0x49   : > { %964 = vmatpush3.bf16.msra.mxu0 %v1055_v9  ;;  %1012 = vmatpush3.bf16.msra.mxu1 %v1055_v9 }
  0x4c   : > { %966 = vmatmul.mubr.bf16.vlgmr.msra.gmra.mrb[0].mxu0 %v1058_v10  ;;  %982 = vmatmul.mubr.bf16.vlgmr.msra.gmra.mrb[0].mxu1 %v1059_v11 }
  0x4d   : > { %969 = vmatprep.mubr.bf16.mxu0 %v1060_v12  ;;  %985 = vmatprep.mubr.bf16.mxu1 %v1061_v13 }
  0x54   : > { %970 = vmatmul.mubr.bf16.gmra.mrb[4].mxu0 %v1062_v14  ;;  %986 = vmatmul.mubr.bf16.gmra.mrb[4].mxu1 %v1063_v15 }
  0x55   : > { %973 = vmatprep.mubr.bf16.mxu0 %v1064_v16  ;;  %989 = vmatprep.mubr.bf16.mxu1 %v1065_v17 }
  0x5c   : > { %974 = vmatmul.mubr.bf16.gmra.mrb[8].mxu0 %v1066_v18  ;;  %990 = vmatmul.mubr.bf16.gmra.mrb[8].mxu1 %v1067_v19 }
  0x5d   : > { %977 = vmatprep.mubr.bf16.mxu0 %v1068_v20  ;;  %993 = vmatprep.mubr.bf16.mxu1 %v1069_v21 }
  0x64   : > { %978 = vmatmul.mubr.bf16.gmra.mrb[12].mxu0 %v1070_v22  ;;  %994 = vmatmul.mubr.bf16.gmra.mrb[12].mxu1 %v1071_v23 }
 0x11f   : > { %v967_v25 = vpop.f32.mrb[0].mxu0  ;;  %v983_v27 = vpop.f32.mrb[0].mxu1 }
 0x120   : > { %v515_v28 = vadd.f32 %v967_v25, %v1262_v24  ;;  %v579_v29 = vadd.f32 %v983_v27, %v1262_v24  ;;  %v506_v30 = vpop.f32.mrb[1].mxu0  ;;  %v570_v31 = vpop.f32.mrb[1].mxu1 }
 0x121   : > { %v507_v32 = vadd.f32 %v1262_v24, %v506_v30  ;;  %v571_v33 = vadd.f32 %v1262_v24, %v570_v31  ;;  %v968_v34 = vpop.f32.mrb[2].mxu0  ;;  %v984_v35 = vpop.f32.mrb[2].mxu1 }
 0x122   : > { %vm635_vm0 = vcmp.ge.f32.partialorder %v515_v28, 0.0  ;;  %v674_v36 = vmul.f32 %v1268_v26, %v515_v28  ;;  %vm651_vm1 = vcmp.ge.f32.partialorder %v579_v29, 0.0  ;;  %v690_v37 = vmul.f32 %v1268_v26, %v579_v29  ;;  %v509_v38 = vpop.f32.mrb[3].mxu0  ;;  %v573_v39 = vpop.f32.mrb[3].mxu1 }
 0x123   : > { %vm633_vm2 = vcmp.ge.f32.partialorder %v507_v32, 0.0  ;;  %v672_v40 = vmul.f32 %v1268_v26, %v507_v32  ;;  %vm649_vm3 = vcmp.ge.f32.partialorder %v571_v33, 0.0  ;;  %v688_v41 = vmul.f32 %v1268_v26, %v571_v33 }
 0x124   : > { %v706_v42 = vsel %vm635_vm0, %v515_v28, %v674_v36  ;;  %v722_v43 = vsel %vm651_vm1, %v579_v29, %v690_v37  ;;  %v518_v44 = vadd.f32 %v968_v34, %v1262_v24  ;;  %v582_v45 = vadd.f32 %v984_v35, %v1262_v24 }
 0x125   : > { %738 = vst [vmem:[%s1277_s13 + $0x10] sm:$0xff] %v706_v42  ;;  %754 = vst [vmem:[%s1277_s13 + $0x90] sm:$0xff] %v722_v43  ;;  %v704_v46 = vsel %vm633_vm2, %v507_v32, %v672_v40  ;;  %v720_v47 = vsel %vm649_vm3, %v571_v33, %v688_v41  ;;  %v510_v48 = vadd.f32 %v1262_v24, %v509_v38 }
 0x126   : > { %v574_v49 = vadd.f32 %v1262_v24, %v573_v39  ;;  %736 = vst [vmem:[%s1277_s13] sm:$0xff] %v704_v46  ;;  %752 = vst [vmem:[%s1277_s13 + $0x80] sm:$0xff] %v720_v47  ;;  %vm636_vm4 = vcmp.ge.f32.partialorder %v518_v44, 0.0  ;;  %v675_v50 = vmul.f32 %v1268_v26, %v518_v44  ;;  %vm652_vm5 = vcmp.ge.f32.partialorder %v582_v45, 0.0 }
 0x127   : > { %v691_v51 = vmul.f32 %v1268_v26, %v582_v45  ;;  %vm634_vm6 = vcmp.ge.f32.partialorder %v510_v48, 0.0  ;;  %v673_v52 = vmul.f32 %v1268_v26, %v510_v48  ;;  %v971_v54 = vpop.f32.mrb[4].mxu0  ;;  %v987_v55 = vpop.f32.mrb[4].mxu1 }
 0x128   : > { %vm650_vm7 = vcmp.ge.f32.partialorder %v574_v49, 0.0  ;;  %v689_v53 = vmul.f32 %v1268_v26, %v574_v49  ;;  %v707_v56 = vsel %vm636_vm4, %v518_v44, %v675_v50  ;;  %v531_v58 = vadd.f32 %v971_v54, %v1262_v24  ;;  %v522_v60 = vpop.f32.mrb[5].mxu0  ;;  %v586_v61 = vpop.f32.mrb[5].mxu1 }
 0x129   : > { %v723_v57 = vsel %vm652_vm5, %v582_v45, %v691_v51  ;;  %v595_v59 = vadd.f32 %v987_v55, %v1262_v24  ;;  %739 = vst [vmem:[%s1277_s13 + $0x18] sm:$0xff] %v707_v56  ;;  %v705_v62 = vsel %vm634_vm6, %v510_v48, %v673_v52  ;;  %v523_v0 = vadd.f32 %v1262_v24, %v522_v60  ;;  %v972_v2 = vpop.f32.mrb[6].mxu0  ;;  %v988_v3 = vpop.f32.mrb[6].mxu1 }
 0x12a   : > { %755 = vst [vmem:[%s1277_s13 + $0x98] sm:$0xff] %v723_v57  ;;  %v721_v63 = vsel %vm650_vm7, %v574_v49, %v689_v53  ;;  %v587_v1 = vadd.f32 %v1262_v24, %v586_v61  ;;  %737 = vst [vmem:[%s1277_s13 + $0x8] sm:$0xff] %v705_v62  ;;  %vm639_vm8 = vcmp.ge.f32.partialorder %v531_v58, 0.0  ;;  %v678_v4 = vmul.f32 %v1268_v26, %v531_v58  ;;  %v525_v6 = vpop.f32.mrb[7].mxu0  ;;  %v589_v7 = vpop.f32.mrb[7].mxu1 }
 0x12b   : > { %753 = vst [vmem:[%s1277_s13 + $0x88] sm:$0xff] %v721_v63  ;;  %vm655_vm9 = vcmp.ge.f32.partialorder %v595_v59, 0.0  ;;  %v694_v5 = vmul.f32 %v1268_v26, %v595_v59  ;;  %vm637_vm10 = vcmp.ge.f32.partialorder %v523_v0, 0.0  ;;  %v676_v8 = vmul.f32 %v1268_v26, %v523_v0 }
 0x12c   : > { %vm653_vm11 = vcmp.ge.f32.partialorder %v587_v1, 0.0  ;;  %v692_v9 = vmul.f32 %v1268_v26, %v587_v1  ;;  %v710_v10 = vsel %vm639_vm8, %v531_v58, %v678_v4  ;;  %v534_v12 = vadd.f32 %v972_v2, %v1262_v24 }
 0x12d   : > { %v726_v11 = vsel %vm655_vm9, %v595_v59, %v694_v5  ;;  %v598_v13 = vadd.f32 %v988_v3, %v1262_v24  ;;  %742 = vst [vmem:[%s1277_s13 + $0x30] sm:$0xff] %v710_v10  ;;  %v708_v14 = vsel %vm637_vm10, %v523_v0, %v676_v8  ;;  %v526_v16 = vadd.f32 %v1262_v24, %v525_v6 }
 0x12e   : > { %758 = vst [vmem:[%s1277_s13 + $0xb0] sm:$0xff] %v726_v11  ;;  %v724_v15 = vsel %vm653_vm11, %v587_v1, %v692_v9  ;;  %v590_v17 = vadd.f32 %v1262_v24, %v589_v7  ;;  %740 = vst [vmem:[%s1277_s13 + $0x20] sm:$0xff] %v708_v14  ;;  %vm640_vm12 = vcmp.ge.f32.partialorder %v534_v12, 0.0  ;;  %v679_v18 = vmul.f32 %v1268_v26, %v534_v12 }
 0x12f   : > { %756 = vst [vmem:[%s1277_s13 + $0xa0] sm:$0xff] %v724_v15  ;;  %vm656_vm13 = vcmp.ge.f32.partialorder %v598_v13, 0.0  ;;  %v695_v19 = vmul.f32 %v1268_v26, %v598_v13  ;;  %vm638_vm14 = vcmp.ge.f32.partialorder %v526_v16, 0.0  ;;  %v677_v20 = vmul.f32 %v1268_v26, %v526_v16  ;;  %v975_v22 = vpop.f32.mrb[8].mxu0  ;;  %v991_v23 = vpop.f32.mrb[8].mxu1 }
 0x130   : > { %vm654_vm15 = vcmp.ge.f32.partialorder %v590_v17, 0.0  ;;  %v693_v21 = vmul.f32 %v1268_v26, %v590_v17  ;;  %v711_v25 = vsel %vm640_vm12, %v534_v12, %v679_v18  ;;  %v547_v28 = vadd.f32 %v975_v22, %v1262_v24  ;;  %v538_v30 = vpop.f32.mrb[9].mxu0  ;;  %v602_v31 = vpop.f32.mrb[9].mxu1 }
 0x131   : > { %v727_v27 = vsel %vm656_vm13, %v598_v13, %v695_v19  ;;  %v611_v29 = vadd.f32 %v991_v23, %v1262_v24  ;;  %743 = vst [vmem:[%s1277_s13 + $0x38] sm:$0xff] %v711_v25  ;;  %v709_v32 = vsel %vm638_vm14, %v526_v16, %v677_v20  ;;  %v539_v34 = vadd.f32 %v1262_v24, %v538_v30  ;;  %v976_v36 = vpop.f32.mrb[10].mxu0  ;;  %v992_v37 = vpop.f32.mrb[10].mxu1 }
 0x132   : > { %759 = vst [vmem:[%s1277_s13 + $0xb8] sm:$0xff] %v727_v27  ;;  %v725_v33 = vsel %vm654_vm15, %v590_v17, %v693_v21  ;;  %v603_v35 = vadd.f32 %v1262_v24, %v602_v31  ;;  %741 = vst [vmem:[%s1277_s13 + $0x28] sm:$0xff] %v709_v32  ;;  %vm643_vm0 = vcmp.ge.f32.partialorder %v547_v28, 0.0  ;;  %v682_v38 = vmul.f32 %v1268_v26, %v547_v28  ;;  %v541_v40 = vpop.f32.mrb[11].mxu0  ;;  %v605_v41 = vpop.f32.mrb[11].mxu1 }
 0x133   : > { %757 = vst [vmem:[%s1277_s13 + $0xa8] sm:$0xff] %v725_v33  ;;  %vm659_vm1 = vcmp.ge.f32.partialorder %v611_v29, 0.0  ;;  %v698_v39 = vmul.f32 %v1268_v26, %v611_v29  ;;  %vm641_vm2 = vcmp.ge.f32.partialorder %v539_v34, 0.0  ;;  %v680_v42 = vmul.f32 %v1268_v26, %v539_v34 }
 0x134   : > { %vm657_vm3 = vcmp.ge.f32.partialorder %v603_v35, 0.0  ;;  %v696_v43 = vmul.f32 %v1268_v26, %v603_v35  ;;  %v714_v44 = vsel %vm643_vm0, %v547_v28, %v682_v38  ;;  %v550_v46 = vadd.f32 %v976_v36, %v1262_v24 }
 0x135   : > { %v730_v45 = vsel %vm659_vm1, %v611_v29, %v698_v39  ;;  %v614_v47 = vadd.f32 %v992_v37, %v1262_v24  ;;  %746 = vst [vmem:[%s1277_s13 + $0x50] sm:$0xff] %v714_v44  ;;  %v712_v48 = vsel %vm641_vm2, %v539_v34, %v680_v42  ;;  %v542_v50 = vadd.f32 %v1262_v24, %v541_v40 }
 0x136   : > { %762 = vst [vmem:[%s1277_s13 + $0xd0] sm:$0xff] %v730_v45  ;;  %v728_v49 = vsel %vm657_vm3, %v603_v35, %v696_v43  ;;  %v606_v51 = vadd.f32 %v1262_v24, %v605_v41  ;;  %744 = vst [vmem:[%s1277_s13 + $0x40] sm:$0xff] %v712_v48  ;;  %vm644_vm4 = vcmp.ge.f32.partialorder %v550_v46, 0.0  ;;  %v683_v52 = vmul.f32 %v1268_v26, %v550_v46 }
 0x137   : > { %760 = vst [vmem:[%s1277_s13 + $0xc0] sm:$0xff] %v728_v49  ;;  %vm660_vm5 = vcmp.ge.f32.partialorder %v614_v47, 0.0  ;;  %v699_v53 = vmul.f32 %v1268_v26, %v614_v47  ;;  %vm642_vm6 = vcmp.ge.f32.partialorder %v542_v50, 0.0  ;;  %v681_v54 = vmul.f32 %v1268_v26, %v542_v50  ;;  %v979_v56 = vpop.f32.mrb[12].mxu0  ;;  %v995_v57 = vpop.f32.mrb[12].mxu1 }
 0x138   : > { %vm658_vm7 = vcmp.ge.f32.partialorder %v606_v51, 0.0  ;;  %v697_v55 = vmul.f32 %v1268_v26, %v606_v51  ;;  %v715_v58 = vsel %vm644_vm4, %v550_v46, %v683_v52  ;;  %v563_v60 = vadd.f32 %v979_v56, %v1262_v24  ;;  %v554_v62 = vpop.f32.mrb[13].mxu0  ;;  %v618_v63 = vpop.f32.mrb[13].mxu1 }
 0x139   : > { %v731_v59 = vsel %vm660_vm5, %v614_v47, %v699_v53  ;;  %v627_v61 = vadd.f32 %v995_v57, %v1262_v24  ;;  %747 = vst [vmem:[%s1277_s13 + $0x58] sm:$0xff] %v715_v58  ;;  %v713_v0 = vsel %vm642_vm6, %v542_v50, %v681_v54  ;;  %v555_v2 = vadd.f32 %v1262_v24, %v554_v62  ;;  %v980_v4 = vpop.f32.mrb[14].mxu0  ;;  %v996_v5 = vpop.f32.mrb[14].mxu1 }
 0x13a   : > { %763 = vst [vmem:[%s1277_s13 + $0xd8] sm:$0xff] %v731_v59  ;;  %v729_v1 = vsel %vm658_vm7, %v606_v51, %v697_v55  ;;  %v619_v3 = vadd.f32 %v1262_v24, %v618_v63  ;;  %745 = vst [vmem:[%s1277_s13 + $0x48] sm:$0xff] %v713_v0  ;;  %vm647_vm8 = vcmp.ge.f32.partialorder %v563_v60, 0.0  ;;  %v686_v6 = vmul.f32 %v1268_v26, %v563_v60  ;;  %v557_v8 = vpop.f32.mrb[15].mxu0  ;;  %v621_v9 = vpop.f32.mrb[15].mxu1 }
 0x13b   : > { %761 = vst [vmem:[%s1277_s13 + $0xc8] sm:$0xff] %v729_v1  ;;  %vm663_vm9 = vcmp.ge.f32.partialorder %v627_v61, 0.0  ;;  %v702_v7 = vmul.f32 %v1268_v26, %v627_v61  ;;  %vm645_vm10 = vcmp.ge.f32.partialorder %v555_v2, 0.0  ;;  %v684_v10 = vmul.f32 %v1268_v26, %v555_v2 }
 0x13c   : > { %vm661_vm11 = vcmp.ge.f32.partialorder %v619_v3, 0.0  ;;  %v700_v11 = vmul.f32 %v1268_v26, %v619_v3  ;;  %v718_v12 = vsel %vm647_vm8, %v563_v60, %v686_v6  ;;  %v566_v14 = vadd.f32 %v980_v4, %v1262_v24 }
 0x13d   : > { %v734_v13 = vsel %vm663_vm9, %v627_v61, %v702_v7  ;;  %v630_v15 = vadd.f32 %v996_v5, %v1262_v24  ;;  %750 = vst [vmem:[%s1277_s13 + $0x70] sm:$0xff] %v718_v12  ;;  %v716_v16 = vsel %vm645_vm10, %v555_v2, %v684_v10  ;;  %v558_v18 = vadd.f32 %v1262_v24, %v557_v8 }
 0x13e   : > { %766 = vst [vmem:[%s1277_s13 + $0xf0] sm:$0xff] %v734_v13  ;;  %v732_v17 = vsel %vm661_vm11, %v619_v3, %v700_v11  ;;  %v622_v19 = vadd.f32 %v1262_v24, %v621_v9  ;;  %748 = vst [vmem:[%s1277_s13 + $0x60] sm:$0xff] %v716_v16  ;;  %vm648_vm12 = vcmp.ge.f32.partialorder %v566_v14, 0.0  ;;  %v687_v20 = vmul.f32 %v1268_v26, %v566_v14 }
 0x13f   : > { %764 = vst [vmem:[%s1277_s13 + $0xe0] sm:$0xff] %v732_v17  ;;  %vm664_vm13 = vcmp.ge.f32.partialorder %v630_v15, 0.0  ;;  %v703_v21 = vmul.f32 %v1268_v26, %v630_v15  ;;  %vm646_vm14 = vcmp.ge.f32.partialorder %v558_v18, 0.0  ;;  %v685_v22 = vmul.f32 %v1268_v26, %v558_v18 }
 0x140   : > { %vm662_vm15 = vcmp.ge.f32.partialorder %v622_v19, 0.0  ;;  %v701_v23 = vmul.f32 %v1268_v26, %v622_v19  ;;  %v719_v25 = vsel %vm648_vm12, %v566_v14, %v687_v20 }
 0x141   : > { %v735_v27 = vsel %vm664_vm13, %v630_v15, %v703_v21  ;;  %751 = vst [vmem:[%s1277_s13 + $0x78] sm:$0xff] %v719_v25  ;;  %v717_v24 = vsel %vm646_vm14, %v558_v18, %v685_v22 }
 0x142   : > { %767 = vst [vmem:[%s1277_s13 + $0xf8] sm:$0xff] %v735_v27  ;;  %v733_v28 = vsel %vm662_vm15, %v622_v19, %v701_v23  ;;  %749 = vst [vmem:[%s1277_s13 + $0x68] sm:$0xff] %v717_v24 }
 0x143   : > { %765 = vst [vmem:[%s1277_s13 + $0xe8] sm:$0xff] %v733_v28 }
 0x144 PF: > { %s15_s17 = sadd.s32 1, %s1126_s17   ;;  %s1393_s15 = smov %s1122_s16 }
 0x145   : > { %p12_p3 = scmp.ge.s32.totalorder %s15_s17, 4   ;;  %s1394_s16 = smov %s1396_s19 }
 0x147   :  { %14 = sbr.rel (!%p12_p3) target bundleno = 2 (0x2), region = 78 }
 0x14e   :  { %796 = vsyncpa [#allocation3], 1 }
 0x14f   :  { %798 = vsyncpa [#allocation3 + $0x1], 1 }

</bundles_post_ra>
